<compile_context>
chip_gen: v7x
topology: tpu7x:2x2x1
jax: 0.10.0
libtpu: 0.0.40
codegen_flags: <defaults>
</compile_context>

<pallas_src>
import jax
import jax.numpy as jnp
import numpy as np
from jax.experimental import pallas as pl
from jax.experimental.pallas import tpu as pltpu

IN_F = 32    # Linear input features
OUT_F = 12   # Linear output features
PACK = 4     # logical rows packed per lane-dense GEMM row (4*32 = 128 lanes)


def _round_up(x, m):
    return -(-x // m) * m


def mapping_kernel(x_ref, w_ref, b_ref, out_ref):
    # One MXU matmul per row block, f32 accumulate, bias fused.
    out_ref[...] = (
        jnp.dot(x_ref[...], w_ref[...], preferred_element_type=jnp.float32)
        + b_ref[...]
    ).astype(out_ref.dtype)


def mapping_forward(x, w_pt, b_pt, *, blk_rows=2048):
    """Pallas forward for Mapping_layer (nn.Linear(32, 12)).

    x:    (..., 32) float32
    w_pt: (12, 32)  float32   -- PyTorch nn.Linear weight layout
    b_pt: (12,)     float32   -- PyTorch nn.Linear bias
    returns (..., 12) float32
    """
    orig_shape = x.shape
    assert orig_shape[-1] == IN_F, orig_shape
    m = int(np.prod(orig_shape[:-1])) if len(orig_shape) > 1 else 1
    x2 = x.reshape(m, IN_F)

    w = jnp.transpose(w_pt)            # (32, 12): right-multiply layout, x @ W == x @ W_pt.T
    b = b_pt.reshape(1, OUT_F)

    if m % PACK == 0 and m >= PACK * 8:
        # Lane-dense packed path: 4 logical rows per GEMM row.
        mp = m // PACK
        xp = x2.reshape(mp, IN_F * PACK)                  # (M/4, 128), free view
        wp = jnp.kron(jnp.eye(PACK, dtype=w.dtype), w)    # (128, 48) block-diagonal
        bp = jnp.tile(b, (1, PACK))                       # (1, 48)
        n_cols = OUT_F * PACK
    else:
        # Tiny or non-multiple-of-4 inputs: plain path (still one fused GEMM).
        mp, xp, wp, bp, n_cols = m, x2, w, b, OUT_F

    k_dim = xp.shape[1]

    # Row-block selection: big, 8-aligned blocks; keep >= 2 grid steps when
    # there is enough work so both v7x TensorCores get a share.
    target = pl.cdiv(mp, 2) if mp >= 16 else mp
    blk = max(8, min(blk_rows, _round_up(target, 8)))

    grid = (pl.cdiv(mp, blk),)   # ragged last block handled by Pallas masking

    out = pl.pallas_call(
        mapping_kernel,
        out_shape=jax.ShapeDtypeStruct((mp, n_cols), jnp.float32),
        grid=grid,
        in_specs=[
            pl.BlockSpec((blk, k_dim), lambda i: (i, 0)),      # x row block
            pl.BlockSpec((k_dim, n_cols), lambda i: (0, 0)),   # full weight
            pl.BlockSpec((1, n_cols), lambda i: (0, 0)),       # full bias
        ],
        out_specs=pl.BlockSpec((blk, n_cols), lambda i: (i, 0)),
        compiler_params=pltpu.CompilerParams(
            dimension_semantics=("parallel",)),
    )(xp, wp, bp)

    # Free view back to (..., 12) (packed 48-lane rows unpack in flat order).
    return out.reshape(*orig_shape[:-1], OUT_F)


def mapping_reference(x, w_pt, b_pt):
    """Pure-JAX reference matching the PyTorch forward."""
    return x @ w_pt.T + b_pt


if __name__ == "__main__":
    key = jax.random.PRNGKey(0)
    kx, kw, kb, kx2 = jax.random.split(key, 4)

    # PyTorch-layout parameters for nn.Linear(32, 12).
    w_pt = jax.random.normal(kw, (OUT_F, IN_F), jnp.float32) * 0.1
    b_pt = jax.random.normal(kb, (OUT_F,), jnp.float32) * 0.1

    # Small shape consistent with the module (trailing feature dim = 32).
    x = jax.random.normal(kx, (2, 8, IN_F), jnp.float32)
    out = jax.block_until_ready(mapping_forward(x, w_pt, b_pt))
    ref = mapping_reference(x, w_pt, b_pt)
    assert out.shape == (2, 8, OUT_F), out.shape
    np.testing.assert_allclose(np.asarray(out), np.asarray(ref),
                               rtol=1e-4, atol=1e-4)

    # Second small case exercising the lane-packed path and a ragged last block.
    x2 = jax.random.normal(kx2, (4, 100, IN_F), jnp.float32)
    out2 = jax.block_until_ready(mapping_forward(x2, w_pt, b_pt))
    ref2 = mapping_reference(x2, w_pt, b_pt)
    assert out2.shape == (4, 100, OUT_F), out2.shape
    np.testing.assert_allclose(np.asarray(out2), np.asarray(ref2),
                               rtol=1e-4, atol=1e-4)

    print("KERNEL_OK")
</pallas_src>

<mosaic_0001>
module attributes {stable_mosaic.version = 11 : i64} {
  func.func @mapping_kernel(%arg0: i32, %arg1: memref<8x32xf32, #tpu.memory_space<vmem>>, %arg2: memref<32x12xf32, #tpu.memory_space<vmem>>, %arg3: memref<1x12xf32, #tpu.memory_space<vmem>>, %arg4: memref<8x12xf32, #tpu.memory_space<vmem>>) attributes {dimension_semantics = [#tpu.dimension_semantics<parallel>], iteration_bounds = array<i64: 2>, scalar_prefetch = 0 : i64, scratch_operands = 0 : i64, tpu.core_type = #tpu.core_type<tc>, window_params = [{transform_indices = @transform_0, window_bounds = array<i64: 8, 32>}, {pipeline_mode = #tpu.pipeline_mode<synchronous>, transform_indices = @transform_1, window_bounds = array<i64: 32, 12>}, {pipeline_mode = #tpu.pipeline_mode<synchronous>, transform_indices = @transform_2, window_bounds = array<i64: 1, 12>}, {transform_indices = @transform_3, window_bounds = array<i64: 8, 12>}]} {
    %c0 = arith.constant 0 : index
    %c0_0 = arith.constant 0 : index
    %0 = vector.load %arg1[%c0, %c0_0] : memref<8x32xf32, #tpu.memory_space<vmem>>, vector<8x32xf32>
    %c0_1 = arith.constant 0 : index
    %c0_2 = arith.constant 0 : index
    %1 = vector.load %arg2[%c0_1, %c0_2] : memref<32x12xf32, #tpu.memory_space<vmem>>, vector<32x12xf32>
    %cst = arith.constant dense<0.000000e+00> : vector<8x12xf32>
    %2 = tpu.matmul %0, %1, %cst {dimension_numbers = #tpu.dot_dimension_numbers<[1], [0], [0], [1], [0, 0, 1, 1], [], []>} : vector<8x32xf32>, vector<32x12xf32>, vector<8x12xf32> -> vector<8x12xf32>
    %c0_3 = arith.constant 0 : index
    %c0_4 = arith.constant 0 : index
    %3 = vector.load %arg3[%c0_3, %c0_4] : memref<1x12xf32, #tpu.memory_space<vmem>>, vector<1x12xf32>
    %4 = vector.broadcast %3 : vector<1x12xf32> to vector<8x12xf32>
    %5 = arith.addf %2, %4 : vector<8x12xf32>
    %c0_5 = arith.constant 0 : index
    %c0_6 = arith.constant 0 : index
    %6 = vector.load %arg4[%c0_5, %c0_6] : memref<8x12xf32, #tpu.memory_space<vmem>>, vector<8x12xf32>
    tpu.vector_store %arg4[%c0_5, %c0_6], %5 {strides = array<i32>} : memref<8x12xf32, #tpu.memory_space<vmem>>, vector<8x12xf32>,
    return
  }
  func.func @transform_0(%arg0: i32) -> (i32, i32) {
    %c0_i32 = arith.constant 0 : i32
    %c0_i32_0 = arith.constant 0 : i32
    return %arg0, %c0_i32 : i32, i32
  }
  func.func @transform_1(%arg0: i32) -> (i32, i32) {
    %c0_i32 = arith.constant 0 : i32
    %c0_i32_0 = arith.constant 0 : i32
    %c0_i32_1 = arith.constant 0 : i32
    return %c0_i32, %c0_i32_0 : i32, i32
  }
  func.func @transform_2(%arg0: i32) -> (i32, i32) {
    %c0_i32 = arith.constant 0 : i32
    %c0_i32_0 = arith.constant 0 : i32
    %c0_i32_1 = arith.constant 0 : i32
    return %c0_i32, %c0_i32_0 : i32, i32
  }
  func.func @transform_3(%arg0: i32) -> (i32, i32) {
    %c0_i32 = arith.constant 0 : i32
    %c0_i32_0 = arith.constant 0 : i32
    return %arg0, %c0_i32 : i32, i32
  }
}

</mosaic_0001>

<bundles_post_ra>
// kernel: tpu_custom_call.1
= control target key start
LH: loop header
LB: loop body
LE: loop exit
PB: predicated region body
PF: predicated region fallthrough
CT: control target
= control target key end

     0   :  { %8 = vsyncpa [#allocation3], 0  ;;  %s606_s0 = inlined_call_operand.vmem [shape: f32[16,32], index: 0, kind: input, shape index: {}]   ;;  %s607_s1 = inlined_call_operand.vmem [shape: f32[32,12], index: 1, kind: input, shape index: {}]   ;;  %s608_s2 = inlined_call_operand.vmem [shape: f32[1,12], index: 2, kind: input, shape index: {}]   ;;  %s609_s3 = inlined_call_operand.hbm [shape: f32[16,12], index: 3, kind: output, shape index: {}]  }
   0x1   :  { %10 = vsyncpa [#allocation3 + $0x1], 0  ;;  %s491_s12 = smov 0   ;;  %s493_s13 = smov 0  }
   0x2   :  { %s495_s14 = smov 0   ;;  %s497_s15 = smov 0  }
   0x3 LB: > { %s512_s16 = sadd.s32 4294967295, %s465_s15   ;;  %s327_s17 = sadd.s32 4294967294, %s465_s15   ;;  %s465_s15 = sphi %s497_s15, %s615_s15   ;;  %s461_s14 = sphi %s495_s14, %s614_s14   ;;  %s457_s13 = sphi %s493_s13, %s613_s13   ;;  %s453_s12 = sphi %s491_s12, %s612_s12  }
   0x4   : > { %s516_s18 = sadd.s32 1, %s465_s15   ;;  %s91_s19 = sadd.s32 1, %s461_s14 }
   0x5   : > { %s88_s20 = ssub.s32 %s465_s15, %s516_s18  ;;  %p101_p0 = scmp.ne.s32.totalorder %s461_s14, %s457_s13 }
   0x6   : > { %p89_p1 = scmp.eq.s32.totalorder %s88_s20, 0  ;;  %p102_p2 = scmp.eq.s32.totalorder %s512_s16, 1 }
   0x7   : > { %p107_p3 = scmp.ne.s32.totalorder %s457_s13, %s453_s12  ;;  %p108_p4 = scmp.eq.s32.totalorder %s327_s17, 1 }
   0x8   : > { %s527_s21 = scalar_select %p89_p1, %s461_s14, %s91_s19  }
   0x9   : > { %p529_p5 = por %p102_p2, %p101_p0  ;;  %p533_p6 = por %p108_p4, %p107_p3 }
   0xa   : > { %p330_p7 = scmp.ge.s32.totalorder %s465_s15, 1  ;;  %p139_p8 = scmp.lt.s32.totalorder %s465_s15, 3 }
   0xc   : > { %p140_p9 = pnand %p330_p7, %p139_p8 }
   0xd   : > { %v167_v0 = vld [vmem:[%s607_s1] sm:$0xff] (!%p140_p9)  ;;  %v168_v1 = vld [vmem:[%s607_s1 + $0x8] sm:$0xff] (!%p140_p9)  ;;  %v169_v2 = vld [vmem:[%s607_s1 + $0x10] sm:$0xff] (!%p140_p9)  ;;  %v467_v3 = vmov (!%p140_p9), 0.0|0.0   ;;  %vm468_vm0 = vmmov (!%p140_p9), 0   ;;  %v469_v6 = vmov (!%p140_p9), 0.0  }
   0xe   : > { %143 = sbr.rel (%p140_p9) target bundleno = 254 (0xfe), region = 32  ;;  %355 = vmatprep.subr.bf16.mxu0 (!%p140_p9), %v467_v3  ;;  %v356_v4 = vpack.c.bf16 (!%p140_p9), %v168_v1, %v167_v0  ;;  %v170_v5 = vld [vmem:[%s607_s1 + $0x18] sm:$0xff] (!%p140_p9)  ;;  %352 = vmatprep.mubr.msk.f32.mxu0 (!%p140_p9), %vm468_vm0, %v469_v6  ;;  %p162_p10 = scmp.lt.s32.totalorder (!%p140_p9), %s512_s16, 1  ;;  %vm178_vm1 = vcmask (!%p140_p9), 261120   ;;  %v333_v9 = vld [vmem:[%s608_s2] ss:$0 sm:$0xff] (!%p140_p9) }
   0xf   : > { %v359_v7 = vpack.c.bf16 (!%p140_p9), %v170_v5, %v169_v2  ;;  %s159_s10 = sand.u32 (!%p140_p9), 1, %s457_s13   ;;  %s336_s20 = sshll.u32 (!%p140_p9), %s512_s16, 7  ;;  %vm252_vm2 = vcmask (!%p140_p9), 97280  }
  0x10   : > { %357 = vmatpush3.bf16.msra.mxu0 (!%p140_p9), %v356_v4  ;;  %s331_s11 = sshll.u32 (!%p140_p9), %s159_s10, 3  ;;  %s564_s28 = scalar_lea.hbm (!%p140_p9), %s609_s3, %s336_s20 }
  0x11   : > { %358 = vmatprep.subr.bf16.mxu0 (!%p140_p9), %v467_v3  ;;  %s161_s24 = scalar_lea.vmem (!%p140_p9), [#allocation2], %s331_s11  ;;  %s255_s29 = scalar_lea.sflag (!%p140_p9), [#allocation3], %s159_s10 }
  0x12   : > { %s268_s25 = sshll.u32 (!%p140_p9), %s161_s24, 4  ;;  %s566_s25 = int_to_ptr.vmem [resolvable:$true] %s268_s25 }
  0x13   : > { %s403_s30 = scalar_lea.vmem (!%p140_p9), %s566_s25, 128 }
  0x14   : > { %360 = vmatpush3.bf16.msra.mxu0 (!%p140_p9), %v359_v7  ;;  %p404_p11 = scmp.ne.s32.totalorder (!%p140_p9), %s566_s25, %s403_s30 }
  0x15   : > { %s163_s5 = scalar_select %p162_p10, %s512_s16, 1 }
  0x16   : > { %p405_p12 = pnand %p404_p11, %p529_p5  ;;  %s470_s16 = smov [#allocation2]  }
  0x17   : > { %s332_s6 = sshll.u32 %s163_s5, 3  ;;  %s407_s4 = sshll.u32 %s470_s16, 4  ;;  %s408_s4 = int_to_ptr.vmem [resolvable:$false] %s407_s4 }
  0x18   : > { %s165_s9 = scalar_lea.vmem %s606_s0, %s332_s6  ;;  %p406_p13 = pneg %p405_p12 }
  0x19   : > { %v166_v8 = vld [vmem:[%s165_s9] sm:$0xff]  ;;  %s409_s5 = scalar_lea.vmem %s408_s4, 256  ;;  %p410_p0 = scmp.lt.s32.totalorder %s566_s25, %s408_s4 }
  0x1a   : > { %353 = vmatmul.mubr.msk.f32.vlgmr.msra.gmra.mrb[0].mxu0 %vm178_vm1, %v166_v8  ;;  %p411_p1 = scmp.lt.s32.totalorder %s409_s5, %s403_s30 }
  0x1c   : > { %p412_p2 = por %p411_p1, %p410_p0 }
  0x1e   : > { %p413_p3 = pnand %p412_p2, %p406_p13 }
  0xed   : > { %v248_v10 = vpop.f32.mrb[0].mxu0 }
  0xee   : > { %v249_v11 = vadd.f32 %v333_v9, %v248_v10  ;;  %v354_v12 = vpop.f32.mrb[1].mxu0 }
  0xf0   : > { %253 = vst.msk [vmem:[%s161_s24] sm:$0xff] %vm252_vm2, %v249_v11 }
  0xf1   : > { %416 = shalt.err (!%p413_p3)
}
  0xf2   : > { %s417_s6 = scalar_lea.hbm %s564_s28, 128  ;;  %s421_s9 = scalar_lea.hbm %s609_s3, 256 }
  0xf3   : > { %p418_p4 = scmp.ne.s32.totalorder %s564_s28, %s417_s6  ;;  %p422_p9 = scmp.lt.u32.totalorder %s564_s28, %s609_s3 }
  0xf4   : > { %p423_p10 = scmp.lt.u32.totalorder %s421_s9, %s417_s6  ;;  %p425_p12 = scmp.lt.u32.totalorder %s417_s6, %s564_s28 }
  0xf5   : > { %p419_p7 = pnand %p418_p4, %p529_p5 }
  0xf6   : > { %p424_p11 = por %p423_p10, %p422_p9 }
  0xf7   : > { %p420_p8 = pneg %p419_p7 }
  0xf8   : > { %p426_p13 = por %p425_p12, %p424_p11 }
  0xfa   : > { %p427_p0 = pnand %p426_p13, %p420_p8 }
  0xfc   : > { %430 = shalt.err (!%p427_p0)
}
  0xfd   : > { %361 = dma.vmem_to_hbm [thread:$0]  (%p529_p5), %s566_s25, 128, %s564_s28, %s255_s29  }
  0xfe PF: > { %p367_p1 = scmp.ge.s32.totalorder %s465_s15, 2  ;;  %s280_s17 = sand.u32 1, %s453_s12  }
  0xff   : > { %s281_s19 = scalar_lea.sflag [#allocation3], %s280_s17 }
 0x100   : > { %p364_p2 = pnand %p367_p1, %p533_p6 }
 0x102   : > { %448 = dma.done.wait (!%p364_p2), %s281_s19, 128  }
 0x103   : > { %450 = vsyncadd (!%p364_p2), %s281_s19, 4294967168  ;;  %p13_p3 = scmp.ge.s32.totalorder %s516_s18, 4   ;;  %s612_s12 = smov %s457_s13 }
 0x104   : > { %s613_s13 = smov %s461_s14  ;;  %s614_s14 = smov %s527_s21 }
 0x105   : > { %s615_s15 = smov %s516_s18  ;;  %15 = sbr.rel (!%p13_p3) target bundleno = 3 (0x3), region = 67 }
 0x10c   :  { %286 = vsyncpa [#allocation3], 1 }
 0x10d   :  { %288 = vsyncpa [#allocation3 + $0x1], 1 }

</bundles_post_ra>
